<compile_context>
chip_gen: v7x
topology: tpu7x:2x2x1
jax: 0.10.0
libtpu: 0.0.40
codegen_flags: <defaults>
</compile_context>

<pallas_src>
import jax
import jax.numpy as jnp
from jax import lax
from jax.experimental import pallas as pl
from jax.experimental.pallas import tpu as pltpu

NEG_SLOPE = 0.01  # nn.LeakyReLU default negative_slope


def _dis_conv_gemm_kernel(w_ref, p_ref, o_ref):
    # w_ref: [OC, K_pad] (bf16, bias folded in)   p_ref: [K_pad, TM] (bf16)
    # o_ref: [OC, TM]    (f32, lane-dense)
    acc = jnp.dot(w_ref[...], p_ref[...], preferred_element_type=jnp.float32)
    o_ref[...] = jnp.maximum(acc, NEG_SLOPE * acc).astype(o_ref.dtype)  # LeakyReLU


def _round_up(x, m):
    return (x + m - 1) // m * m


def spectral_normalize(weight, u0, n_power_iterations=1, eps=1e-12):
    """weight / sigma, sigma from power iteration (mirrors nn.utils.spectral_norm)."""
    oc = weight.shape[0]
    w2d = weight.reshape(oc, -1)

    def _normalize(v):
        return v / (jnp.linalg.norm(v) + eps)

    u = _normalize(u0)
    v = None
    for _ in range(max(1, n_power_iterations)):
        v = _normalize(w2d.T @ u)
        u = _normalize(w2d @ v)
    # PyTorch computes u, v under no_grad; only sigma's direct W-dependence gets grads.
    u = lax.stop_gradient(u)
    v = lax.stop_gradient(v)
    sigma = jnp.dot(u, w2d @ v)
    return weight / sigma


def _pick_tile_m(M, tile_m, k_pad, itemsize):
    m128 = _round_up(M, 128)
    tm = min(_round_up(max(tile_m, 128), 128), m128)
    # Keep double-buffered patches tile comfortably under v5e's 16 MiB scoped VMEM.
    vmem_budget = 8 << 20
    tm_cap = max(128, (vmem_budget // (2 * k_pad * itemsize)) // 128 * 128)
    tm = min(tm, tm_cap)
    # Give the "parallel" grid axis >= 2 steps when M allows (v7x has 2 TensorCores).
    if m128 >= 256:
        tm = min(tm, max(128, _round_up(m128 // 2, 128)))
    return tm


def dis_conv_forward(x, weight, bias, u0, *, stride=2, padding=2, tile_m=2048,
                     compute_dtype=jnp.bfloat16):
    """x: NCHW f32, weight: [OC, C, KH, KW], bias: [OC], u0: [OC]. Returns NCHW f32."""
    N, C, H, W = x.shape
    OC, _, KH, KW = weight.shape
    OH = (H + 2 * padding - KH) // stride + 1
    OW = (W + 2 * padding - KW) // stride + 1
    M = N * OH * OW
    K = C * KH * KW

    # --- glue: spectral-normalize the (tiny) weight, as the module does ---
    w_sn = spectral_normalize(weight, u0)

    # --- glue: im2col, built directly in transposed [K, M] order, in compute dtype ---
    # rows = (c, kh, kw) (matches OIHW weight flattening), cols = (n, oh, ow)
    xp = jnp.pad(x.astype(compute_dtype),
                 ((0, 0), (0, 0), (padding, padding), (padding, padding)))
    taps = []
    for kh in range(KH):
        for kw in range(KW):
            taps.append(
                xp[:, :,
                   kh:kh + stride * (OH - 1) + 1:stride,
                   kw:kw + stride * (OW - 1) + 1:stride])   # [N, C, OH, OW]
    patches = jnp.stack(taps, axis=0)                        # [KH*KW, N, C, OH, OW]
    patches = jnp.transpose(patches, (2, 0, 1, 3, 4))        # [C, KH*KW, N, OH, OW]
    patches_t = patches.reshape(K, M)                        # [K, M]

    # --- alignment: pad K only to a sublane multiple (room for the bias ones-row) ---
    K_pad = _round_up(K + 1, 16)                             # 100 -> 112 (not 128)
    itemsize = jnp.dtype(compute_dtype).itemsize
    tm = _pick_tile_m(M, tile_m, K_pad, itemsize)
    M_pad = _round_up(M, tm)

    ones_row = jnp.ones((1, M), compute_dtype)               # bias fold: P[K, :] = 1
    zero_rows = jnp.zeros((K_pad - K - 1, M), compute_dtype)
    patches_t = jnp.concatenate([patches_t, ones_row, zero_rows], axis=0)
    patches_t = jnp.pad(patches_t, ((0, 0), (0, M_pad - M))) # [K_pad, M_pad]

    w_aug = jnp.concatenate(                                  # [OC, K_pad], bias column at K
        [w_sn.reshape(OC, K),
         bias.reshape(OC, 1),
         jnp.zeros((OC, K_pad - K - 1), w_sn.dtype)], axis=1).astype(compute_dtype)

    grid = (M_pad // tm,)
    flops = 2 * M_pad * K_pad * OC
    bytes_accessed = (itemsize * (K_pad * M_pad + OC * K_pad) + 4 * OC * M_pad)

    out = pl.pallas_call(
        _dis_conv_gemm_kernel,
        out_shape=jax.ShapeDtypeStruct((OC, M_pad), jnp.float32),
        grid=grid,
        in_specs=[
            pl.BlockSpec((OC, K_pad), lambda i: (0, 0)),     # weight(+bias): VMEM-resident
            pl.BlockSpec((K_pad, tm), lambda i: (0, i)),     # patches: tiled over M
        ],
        out_specs=pl.BlockSpec((OC, tm), lambda i: (0, i)),  # lane-dense output
        compiler_params=pltpu.CompilerParams(
            dimension_semantics=("parallel",)),
        cost_estimate=pl.CostEstimate(
            flops=flops, transcendentals=0, bytes_accessed=bytes_accessed),
    )(w_aug, patches_t)

    # [OC, M] -> [OC, N, OH, OW] -> NCHW [N, OC, OH, OW]
    out = out[:, :M].reshape(OC, N, OH, OW)
    return jnp.transpose(out, (1, 0, 2, 3)).astype(x.dtype)


if __name__ == "__main__":
    # Module config: _dis_conv(in_channels=4, out_channels=8)
    N, C, H, W = 2, 4, 16, 16
    OC, KH, KW = 8, 5, 5

    key = jax.random.PRNGKey(0)
    kx, kw_, ku = jax.random.split(key, 3)
    x = jax.random.normal(kx, (N, C, H, W), dtype=jnp.float32)
    weight = jax.random.normal(kw_, (OC, C, KH, KW), dtype=jnp.float32) * 0.1
    bias = jnp.zeros((OC,), dtype=jnp.float32)               # module zero-inits bias
    u0 = jax.random.normal(ku, (OC,), dtype=jnp.float32)     # spectral-norm u vector

    fwd = jax.jit(lambda a, b, c, d: dis_conv_forward(a, b, c, d, stride=2, padding=2))
    out = fwd(x, weight, bias, u0)
    out = jax.block_until_ready(out)

    # Reference: spectral-normalized conv with the same bf16 input/weight quantization
    # (accumulation in f32), + bias + LeakyReLU.
    w_sn = spectral_normalize(weight, u0)
    xq = x.astype(jnp.bfloat16).astype(jnp.float32)
    wq = w_sn.astype(jnp.bfloat16).astype(jnp.float32)
    ref = lax.conv_general_dilated(
        xq, wq, window_strides=(2, 2), padding=((2, 2), (2, 2)),
        dimension_numbers=("NCHW", "OIHW", "NCHW"),
    ) + bias.reshape(1, OC, 1, 1)
    ref = jnp.maximum(ref, NEG_SLOPE * ref)

    assert out.shape == (N, OC, 8, 8), out.shape
    assert jnp.allclose(out, ref, atol=2e-3, rtol=2e-3), "mismatch vs reference conv"
    print("KERNEL_OK")
</pallas_src>

<mosaic_0001>
module attributes {stable_mosaic.version = 11 : i64} {
  func.func @_dis_conv_gemm_kernel(%arg0: i32, %arg1: memref<8x112xbf16, #tpu.memory_space<vmem>>, %arg2: memref<112x128xbf16, #tpu.memory_space<vmem>>, %arg3: memref<8x128xf32, #tpu.memory_space<vmem>>) attributes {dimension_semantics = [#tpu.dimension_semantics<parallel>], iteration_bounds = array<i64: 1>, scalar_prefetch = 0 : i64, scratch_operands = 0 : i64, tpu.core_type = #tpu.core_type<tc>, window_params = [{pipeline_mode = #tpu.pipeline_mode<synchronous>, transform_indices = @transform_0, window_bounds = array<i64: 8, 112>}, {transform_indices = @transform_1, window_bounds = array<i64: 112, 128>}, {transform_indices = @transform_2, window_bounds = array<i64: 8, 128>}]} {
    %c0 = arith.constant 0 : index
    %c0_0 = arith.constant 0 : index
    %0 = vector.load %arg1[%c0, %c0_0] : memref<8x112xbf16, #tpu.memory_space<vmem>>, vector<8x112xbf16>
    %c0_1 = arith.constant 0 : index
    %c0_2 = arith.constant 0 : index
    %1 = vector.load %arg2[%c0_1, %c0_2] : memref<112x128xbf16, #tpu.memory_space<vmem>>, vector<112x128xbf16>
    %cst = arith.constant dense<0.000000e+00> : vector<8x128xf32>
    %2 = tpu.matmul %0, %1, %cst {dimension_numbers = #tpu.dot_dimension_numbers<[1], [0], [0], [1], [0, 0, 1, 1], [], []>} : vector<8x112xbf16>, vector<112x128xbf16>, vector<8x128xf32> -> vector<8x128xf32>
    %cst_3 = arith.constant 0.00999999977 : f32
    %3 = vector.broadcast %cst_3 : f32 to vector<8x128xf32>
    %4 = arith.mulf %3, %2 : vector<8x128xf32>
    %5 = arith.maximumf %2, %4 : vector<8x128xf32>
    %c0_4 = arith.constant 0 : index
    %c0_5 = arith.constant 0 : index
    %6 = vector.load %arg3[%c0_4, %c0_5] : memref<8x128xf32, #tpu.memory_space<vmem>>, vector<8x128xf32>
    tpu.vector_store %arg3[%c0_4, %c0_5], %5 {strides = array<i32>} : memref<8x128xf32, #tpu.memory_space<vmem>>, vector<8x128xf32>,
    return
  }
  func.func @transform_0(%arg0: i32) -> (i32, i32) {
    %c0_i32 = arith.constant 0 : i32
    %c0_i32_0 = arith.constant 0 : i32
    %c0_i32_1 = arith.constant 0 : i32
    return %c0_i32, %c0_i32_0 : i32, i32
  }
  func.func @transform_1(%arg0: i32) -> (i32, i32) {
    %c0_i32 = arith.constant 0 : i32
    %c0_i32_0 = arith.constant 0 : i32
    return %c0_i32, %arg0 : i32, i32
  }
  func.func @transform_2(%arg0: i32) -> (i32, i32) {
    %c0_i32 = arith.constant 0 : i32
    %c0_i32_0 = arith.constant 0 : i32
    return %c0_i32, %arg0 : i32, i32
  }
}

</mosaic_0001>

<bundles_post_ra>
// kernel: _lambda_.1
= control target key start
LH: loop header
LB: loop body
LE: loop exit
PB: predicated region body
PF: predicated region fallthrough
CT: control target
= control target key end

     0   :  { %v163_v0 = vmov 0.0   ;;  %vm164_vm0 = vmmov 0   ;;  %vm69_vm1 = vcmask 916480   ;;  %s207_s1 = inlined_call_operand.vmem [shape: bf16[112,128], index: 1, kind: input, shape index: {}]   ;;  %s208_s0 = inlined_call_operand.vmem [shape: bf16[8,112], index: 0, kind: input, shape index: {}]   ;;  %s209_s2 = inlined_call_operand.vmem [shape: f32[8,128], index: 2, kind: output, shape index: {}]  }
   0x1   :  { %136 = vmatprep.subr.bf16.mxu0 %v163_v0  ;;  %v156_v1 = vld [vmem:[%s207_s1] sm:$0xff]   ;;  %150 = vmatprep.mubr.msk.bf16.mxu0 %vm164_vm0, %v163_v0  ;;  %v157_v2 = vld [vmem:[%s207_s1 + $0x8] sm:$0xff]   ;;  %v158_v3 = vld [vmem:[%s207_s1 + $0x10] sm:$0xff]  }
   0x2   :  { %137 = vmatpush3.bf16.msra.mxu0 %v156_v1  ;;  %v159_v4 = vld [vmem:[%s207_s1 + $0x18] sm:$0xff]   ;;  %v160_v5 = vld [vmem:[%s207_s1 + $0x20] sm:$0xff]   ;;  %v161_v6 = vld [vmem:[%s207_s1 + $0x28] sm:$0xff]  }
   0x3   :  { %138 = vmatprep.subr.bf16.mxu0 %v163_v0  ;;  %v162_v7 = vld [vmem:[%s207_s1 + $0x30] sm:$0xff]   ;;  %v12_v8 = vld [vmem:[%s208_s0] sm:$0xf] }
   0x6   :  { %139 = vmatpush3.bf16.msra.mxu0 %v157_v2 }
   0x7   :  { %140 = vmatprep.subr.bf16.mxu0 %v163_v0 }
   0xa   :  { %141 = vmatpush3.bf16.msra.mxu0 %v158_v3 }
   0xb   :  { %142 = vmatprep.subr.bf16.mxu0 %v163_v0 }
   0xe   :  { %143 = vmatpush3.bf16.msra.mxu0 %v159_v4 }
   0xf   :  { %144 = vmatprep.subr.bf16.mxu0 %v163_v0 }
  0x12   :  { %145 = vmatpush3.bf16.msra.mxu0 %v160_v5 }
  0x13   :  { %146 = vmatprep.subr.bf16.mxu0 %v163_v0 }
  0x16   :  { %147 = vmatpush3.bf16.msra.mxu0 %v161_v6 }
  0x17   :  { %148 = vmatprep.subr.bf16.mxu0 %v163_v0 }
  0x1a   :  { %149 = vmatpush3.bf16.msra.mxu0 %v162_v7 }
  0x1d   :  { %151 = vmatmul.mubr.msk.bf16.vlgmr.msra.gmra.mrb[0].mxu0 %vm69_vm1, %v12_v8 }
  0xf0   :  { %v107_v9 = vpop.f32.mrb[0].mxu0 }
  0xf1   :  { %v113_v10 = vmul.f32 0.01, %v107_v9  ;;  %v152_v11 = vpop.f32.mrb[1].mxu0 }
  0xf2   :  { %v110_v12 = vpop.f32.mrb[2].mxu0 }
  0xf3   :  { %v114_v13 = vmax.f32 %v107_v9, %v113_v10  ;;  %v153_v14 = vpop.f32.mrb[3].mxu0 }
  0xf5   :  { %115 = vst [vmem:[%s209_s2] sm:$0xff] %v114_v13 }

</bundles_post_ra>
